<compile_context>
chip_gen: v6e
topology: v6e:2x2x1
jax: 0.10.0
libtpu: 0.0.40
codegen_flags: <defaults>
</compile_context>

<pallas_src>
import functools

import jax
import jax.numpy as jnp
from jax.experimental import pallas as pl
from jax.experimental.pallas import tpu as pltpu


def _round_up(x, m):
    return (x + m - 1) // m * m


def _tpu_budget():
    """Best-effort (vmem_budget_bytes, tensorcores_per_device)."""
    vmem_cap = 64 * 1024 * 1024            # conservative default (v7x per-TC)
    try:
        cap = getattr(pltpu.get_tpu_info(), "vmem_capacity_bytes", None)
        if cap:
            vmem_cap = int(cap)
    except Exception:
        pass
    cores = 1
    try:
        kind = jax.devices()[0].device_kind.lower()
        # v5e / v6e ("lite") and v2/v3 expose one TensorCore per device;
        # v4 / v5p / v7x megacore parts expose two.
        if not any(tag in kind for tag in ("lite", "v5e", "v6e", "v2", "v3")):
            cores = 2
    except Exception:
        pass
    return (3 * vmem_cap) // 4, cores      # keep ~25% VMEM headroom


def _rows_to_token_major(rows, n_keep):
    """(R, TILE) -> (TILE, n_keep) == rows[:n_keep].T.

    Pads the (small) row axis to a sublane multiple of 8 before the in-register
    transpose so the XLU sees a well-formed (8k, 128m) 32-bit tile.
    """
    r, tile = rows.shape
    pad = (-r) % 8
    if pad:
        rows = jnp.concatenate(
            [rows, jnp.zeros((pad, tile), rows.dtype)], axis=0)
    return rows.T[:, :n_keep]


def _router_kernel(x_ref, w_ref, b_ref, out_ref, idx_ref, *, top_k):
    # x_ref  : (TILE, D)     natural token-major layout (no host transpose)
    # w_ref  : (E, D)        nn.Linear weight in its native (E, D) layout
    # b_ref  : (E, 1)        bias, f32
    # out_ref: (TILE, E)     router probabilities, f32
    # idx_ref: (TILE, top_k) selected expert ids, int32
    x = x_ref[...]
    w = w_ref[...]
    b = b_ref[...].astype(jnp.float32)

    # logits^T[e, t] = sum_d W[e, d] * x[t, d] -- contract dim 1 of BOTH
    # operands so the token axis lands on the 128-lane axis (lane-dense
    # compute) without ever materializing x^T.  MXU, f32 accumulation.
    logits = jax.lax.dot_general(
        w, x, dimension_numbers=(((1,), (1,)), ((), ())),
        preferred_element_type=jnp.float32) + b            # (E, TILE)

    e, tile = logits.shape
    expert_iota = jax.lax.broadcasted_iota(jnp.int32, (e, tile), 0)
    neg_inf = jnp.float32(-jnp.inf)

    # Iterative top-k over the (small) expert / sublane axis: take the max,
    # record its index, mask it out, repeat.  Descending by logit, matching
    # torch.topk; ties break to the smallest expert index.
    # (A combined value+index key would halve the sublane reductions, but the
    # kernel is HBM-bound, so it's not worth the complexity at E=8, top_k=2.)
    working = logits
    sel_mask = jnp.zeros((e, tile), dtype=jnp.bool_)
    idx_rows = []
    for _ in range(top_k):
        mx = jnp.max(working, axis=0, keepdims=True)                  # (1, TILE)
        is_max = working == mx
        idx = jnp.min(jnp.where(is_max, expert_iota, e), axis=0, keepdims=True)
        sel = expert_iota == idx                                      # (E, TILE)
        sel_mask = jnp.logical_or(sel_mask, sel)
        working = jnp.where(sel, neg_inf, working)
        idx_rows.append(idx)

    # sparse_logits = top-k logits scattered into -inf, softmax over experts.
    sparse = jnp.where(sel_mask, logits, neg_inf)
    m = jnp.max(sparse, axis=0, keepdims=True)
    ex = jnp.exp(sparse - m)                                          # exp(-inf)=0
    denom = jnp.sum(ex, axis=0, keepdims=True)
    probs = ex / denom                        # exact division: rows sum to 1

    # Store token-major so the wrapper only reshapes (no XLA transpose pass).
    out_ref[...] = _rows_to_token_major(probs, e).astype(out_ref.dtype)
    idx_f = jnp.concatenate(idx_rows, axis=0).astype(jnp.float32)     # (top_k, TILE)
    idx_ref[...] = _rows_to_token_major(idx_f, top_k).astype(jnp.int32)


def topk_router(mh_output, weight, bias, top_k, *, token_tile=1024):
    """mh_output: [B, T, D]; weight: [E, D] (nn.Linear layout); bias: [E].

    Returns (router_output [B, T, E] float32, indices [B, T, top_k] int32).
    """
    b_dim, t_dim, d = mh_output.shape
    e = weight.shape[0]
    n = b_dim * t_dim

    # Natural [N, D] layout (free reshape); match the weight dtype to the
    # activations so bf16 inputs stay on the single-pass bf16 MXU path.
    x2 = mh_output.reshape(n, d)
    w = weight.astype(mh_output.dtype)
    b2 = bias.reshape(e, 1).astype(jnp.float32)

    budget, n_cores = _tpu_budget()

    # --- token-tile selection (VMEM- and generation-aware) -------------------
    x_item = x2.dtype.itemsize
    fixed = 2 * (e * d * w.dtype.itemsize + e * 4)            # resident W, b (2 bufs)
    per_tok = 2 * (d * x_item + e * 4 + top_k * 4)            # x + out blocks (2 bufs)

    n_lane = _round_up(n, 128)
    max_tile = max(128, ((budget - fixed) // max(per_tok, 1)) // 128 * 128)
    tile = max(128, min(token_tile, max_tile, n_lane) // 128 * 128)

    steps = pl.cdiv(n_lane, tile)
    if n_cores > 1 and n_lane >= 256:
        # Multi-TensorCore part: at least 2 and an even number of grid steps so
        # both cores get equal shares of the "parallel" axis.  On single-TC
        # parts (v5e/v6e) keep one big tile when it fits.
        steps = max(2, steps)
        if steps % 2:
            steps += 1
    tile = max(128, _round_up(pl.cdiv(n_lane, steps), 128))   # still <= max_tile

    n_pad = _round_up(n, tile)
    if n_pad != n:
        x2 = jnp.pad(x2, ((0, n_pad - n), (0, 0)))            # padded tokens sliced off
    grid = n_pad // tile

    # Right-sized scoped-VMEM request (v5e default is only 16 MiB; never exceed
    # ~75% of this generation's physical VMEM, which keeps v7x's 64 MiB safe).
    vmem_est = fixed + tile * per_tok
    vmem_limit = int(min(budget, max(4 * 1024 * 1024, 2 * vmem_est)))

    kernel = functools.partial(_router_kernel, top_k=top_k)

    out, idx = pl.pallas_call(
        kernel,
        out_shape=(
            jax.ShapeDtypeStruct((n_pad, e), jnp.float32),
            jax.ShapeDtypeStruct((n_pad, top_k), jnp.int32),
        ),
        grid_spec=pltpu.PrefetchScalarGridSpec(
            num_scalar_prefetch=0,
            grid=(grid,),
            in_specs=[
                # x streams untransposed over the token axis.
                pl.BlockSpec((tile, d), lambda i: (i, 0)),
                # W and b have constant index maps so they are fetched once.
                pl.BlockSpec((e, d), lambda i: (0, 0)),
                pl.BlockSpec((e, 1), lambda i: (0, 0)),
            ],
            out_specs=[
                pl.BlockSpec((tile, e), lambda i: (i, 0)),
                pl.BlockSpec((tile, top_k), lambda i: (i, 0)),
            ],
        ),
        compiler_params=pltpu.CompilerParams(
            dimension_semantics=("parallel",),
            vmem_limit_bytes=vmem_limit),
    )(x2, w, b2)

    # Token-major outputs: just slice off padding and reshape (no HBM transpose).
    router_out = out[:n].reshape(b_dim, t_dim, e)
    indices = idx[:n].reshape(b_dim, t_dim, top_k)
    return router_out, indices


if __name__ == "__main__":
    # Small shapes consistent with the module's router: a sequence of token
    # embeddings routed over 8 experts with top_k=2.
    B, T, N_EMBED, NUM_EXPERTS, TOP_K = 2, 8, 32, 8, 2

    key = jax.random.PRNGKey(0)
    k_x, k_w, k_b = jax.random.split(key, 3)

    mh_output = jax.random.normal(k_x, (B, T, N_EMBED), dtype=jnp.float32)
    # Deterministic init matching nn.Linear parameter shapes (E, D) / (E,)
    bound = 1.0 / (N_EMBED ** 0.5)
    weight = jax.random.uniform(k_w, (NUM_EXPERTS, N_EMBED),
                                minval=-bound, maxval=bound, dtype=jnp.float32)
    bias = jax.random.uniform(k_b, (NUM_EXPERTS,),
                              minval=-bound, maxval=bound, dtype=jnp.float32)

    router_output, indices = topk_router(mh_output, weight, bias, TOP_K)
    jax.block_until_ready((router_output, indices))

    print("KERNEL_OK")
</pallas_src>

<mosaic_0001>
module attributes {stable_mosaic.version = 11 : i64} {
  func.func @_router_kernel(%arg0: i32, %arg1: memref<128x32xf32, #tpu.memory_space<vmem>>, %arg2: memref<8x32xf32, #tpu.memory_space<vmem>>, %arg3: memref<8x1xf32, #tpu.memory_space<vmem>>, %arg4: memref<128x8xf32, #tpu.memory_space<vmem>>, %arg5: memref<128x2xi32, #tpu.memory_space<vmem>>) attributes {dimension_semantics = [#tpu.dimension_semantics<parallel>], iteration_bounds = array<i64: 1>, scalar_prefetch = 0 : i64, scratch_operands = 0 : i64, tpu.core_type = #tpu.core_type<tc>, window_params = [{transform_indices = @transform_0, window_bounds = array<i64: 128, 32>}, {pipeline_mode = #tpu.pipeline_mode<synchronous>, transform_indices = @transform_1, window_bounds = array<i64: 8, 32>}, {pipeline_mode = #tpu.pipeline_mode<synchronous>, transform_indices = @transform_2, window_bounds = array<i64: 8, 1>}, {transform_indices = @transform_3, window_bounds = array<i64: 128, 8>}, {transform_indices = @transform_4, window_bounds = array<i64: 128, 2>}]} {
    %c0 = arith.constant 0 : index
    %c0_0 = arith.constant 0 : index
    %0 = vector.load %arg1[%c0, %c0_0] : memref<128x32xf32, #tpu.memory_space<vmem>>, vector<128x32xf32>
    %c0_1 = arith.constant 0 : index
    %c0_2 = arith.constant 0 : index
    %1 = vector.load %arg2[%c0_1, %c0_2] : memref<8x32xf32, #tpu.memory_space<vmem>>, vector<8x32xf32>
    %c0_3 = arith.constant 0 : index
    %c0_4 = arith.constant 0 : index
    %2 = vector.load %arg3[%c0_3, %c0_4] : memref<8x1xf32, #tpu.memory_space<vmem>>, vector<8x1xf32>
    %cst = arith.constant dense<0.000000e+00> : vector<8x128xf32>
    %3 = tpu.matmul %1, %0, %cst {dimension_numbers = #tpu.dot_dimension_numbers<[1], [1], [0], [0], [0, 0, 1, 0], [], []>} : vector<8x32xf32>, vector<128x32xf32>, vector<8x128xf32> -> vector<8x128xf32>
    %4 = vector.broadcast %2 : vector<8x1xf32> to vector<8x128xf32>
    %5 = arith.addf %3, %4 : vector<8x128xf32>
    %6 = tpu.iota {dimensions = array<i32: 0>} : vector<8x128xi32>
    %false = arith.constant false
    %7 = vector.broadcast %false : i1 to vector<8x128xi1>
    %cst_5 = arith.constant dense<0xFF800000> : vector<128xf32>
    %8 = vector.multi_reduction <maximumf>, %5, %cst_5 [0] : vector<8x128xf32> to vector<128xf32>
    %9 = vector.shape_cast %8 : vector<128xf32> to vector<1x128xf32>
    %10 = vector.broadcast %9 : vector<1x128xf32> to vector<8x128xf32>
    %11 = arith.cmpf oeq, %5, %10 : vector<8x128xf32>
    %c8_i32 = arith.constant 8 : i32
    %12 = vector.broadcast %c8_i32 : i32 to vector<8x128xi32>
    %13 = arith.select %11, %6, %12 : vector<8x128xi1>, vector<8x128xi32>
    %cst_6 = arith.constant dense<2147483647> : vector<128xi32>
    %14 = vector.multi_reduction <minsi>, %13, %cst_6 [0] : vector<8x128xi32> to vector<128xi32>
    %15 = vector.shape_cast %14 : vector<128xi32> to vector<1x128xi32>
    %16 = vector.broadcast %15 : vector<1x128xi32> to vector<8x128xi32>
    %17 = arith.cmpi eq, %6, %16 : vector<8x128xi32>
    %18 = arith.ori %7, %17 : vector<8x128xi1>
    %cst_7 = arith.constant 0xFF800000 : f32
    %19 = vector.broadcast %cst_7 : f32 to vector<8x128xf32>
    %20 = arith.select %17, %19, %5 : vector<8x128xi1>, vector<8x128xf32>
    %cst_8 = arith.constant dense<0xFF800000> : vector<128xf32>
    %21 = vector.multi_reduction <maximumf>, %20, %cst_8 [0] : vector<8x128xf32> to vector<128xf32>
    %22 = vector.shape_cast %21 : vector<128xf32> to vector<1x128xf32>
    %23 = vector.broadcast %22 : vector<1x128xf32> to vector<8x128xf32>
    %24 = arith.cmpf oeq, %20, %23 : vector<8x128xf32>
    %c8_i32_9 = arith.constant 8 : i32
    %25 = vector.broadcast %c8_i32_9 : i32 to vector<8x128xi32>
    %26 = arith.select %24, %6, %25 : vector<8x128xi1>, vector<8x128xi32>
    %cst_10 = arith.constant dense<2147483647> : vector<128xi32>
    %27 = vector.multi_reduction <minsi>, %26, %cst_10 [0] : vector<8x128xi32> to vector<128xi32>
    %28 = vector.shape_cast %27 : vector<128xi32> to vector<1x128xi32>
    %29 = vector.broadcast %28 : vector<1x128xi32> to vector<8x128xi32>
    %30 = arith.cmpi eq, %6, %29 : vector<8x128xi32>
    %31 = arith.ori %18, %30 : vector<8x128xi1>
    %cst_11 = arith.constant 0xFF800000 : f32
    %32 = vector.broadcast %cst_11 : f32 to vector<8x128xf32>
    %33 = arith.select %31, %5, %32 : vector<8x128xi1>, vector<8x128xf32>
    %cst_12 = arith.constant dense<0xFF800000> : vector<128xf32>
    %34 = vector.multi_reduction <maximumf>, %33, %cst_12 [0] : vector<8x128xf32> to vector<128xf32>
    %35 = vector.shape_cast %34 : vector<128xf32> to vector<1x128xf32>
    %36 = vector.broadcast %35 : vector<1x128xf32> to vector<8x128xf32>
    %37 = arith.subf %33, %36 : vector<8x128xf32>
    %38 = math.exp %37 : vector<8x128xf32>
    %cst_13 = arith.constant dense<0.000000e+00> : vector<128xf32>
    %39 = vector.multi_reduction <add>, %38, %cst_13 [0] : vector<8x128xf32> to vector<128xf32>
    %40 = vector.shape_cast %39 : vector<128xf32> to vector<1x128xf32>
    %41 = vector.broadcast %40 : vector<1x128xf32> to vector<8x128xf32>
    %42 = arith.divf %38, %41 : vector<8x128xf32>
    %43 = tpu.transpose %42, [1, 0] : vector<8x128xf32> -> vector<128x8xf32>
    %c0_14 = arith.constant 0 : index
    %c0_15 = arith.constant 0 : index
    %44 = vector.load %arg4[%c0_14, %c0_15] : memref<128x8xf32, #tpu.memory_space<vmem>>, vector<128x8xf32>
    tpu.vector_store %arg4[%c0_14, %c0_15], %43 {strides = array<i32>} : memref<128x8xf32, #tpu.memory_space<vmem>>, vector<128x8xf32>,
    %45 = tpu.concatenate %15, %28 in 0 : vector<1x128xi32>, vector<1x128xi32> -> vector<2x128xi32>
    %46 = arith.sitofp %45 : vector<2x128xi32> to vector<2x128xf32>
    %cst_16 = arith.constant 0.000000e+00 : f32
    %47 = vector.broadcast %cst_16 : f32 to vector<6x128xf32>
    %48 = tpu.concatenate %46, %47 in 0 : vector<2x128xf32>, vector<6x128xf32> -> vector<8x128xf32>
    %49 = tpu.transpose %48, [1, 0] : vector<8x128xf32> -> vector<128x8xf32>
    %50 = vector.extract_strided_slice %49 {offsets = [0, 0], sizes = [128, 2], strides = [1, 1]} : vector<128x8xf32> to vector<128x2xf32>
    %51 = arith.fptosi %50 : vector<128x2xf32> to vector<128x2xi32>
    %c0_17 = arith.constant 0 : index
    %c0_18 = arith.constant 0 : index
    %52 = vector.load %arg5[%c0_17, %c0_18] : memref<128x2xi32, #tpu.memory_space<vmem>>, vector<128x2xi32>
    tpu.vector_store %arg5[%c0_17, %c0_18], %51 {strides = array<i32>} : memref<128x2xi32, #tpu.memory_space<vmem>>, vector<128x2xi32>,
    return
  }
  func.func @transform_0(%arg0: i32) -> (i32, i32) {
    %c0_i32 = arith.constant 0 : i32
    %c0_i32_0 = arith.constant 0 : i32
    return %arg0, %c0_i32 : i32, i32
  }
  func.func @transform_1(%arg0: i32) -> (i32, i32) {
    %c0_i32 = arith.constant 0 : i32
    %c0_i32_0 = arith.constant 0 : i32
    %c0_i32_1 = arith.constant 0 : i32
    return %c0_i32, %c0_i32_0 : i32, i32
  }
  func.func @transform_2(%arg0: i32) -> (i32, i32) {
    %c0_i32 = arith.constant 0 : i32
    %c0_i32_0 = arith.constant 0 : i32
    %c0_i32_1 = arith.constant 0 : i32
    return %c0_i32, %c0_i32_0 : i32, i32
  }
  func.func @transform_3(%arg0: i32) -> (i32, i32) {
    %c0_i32 = arith.constant 0 : i32
    %c0_i32_0 = arith.constant 0 : i32
    return %arg0, %c0_i32 : i32, i32
  }
  func.func @transform_4(%arg0: i32) -> (i32, i32) {
    %c0_i32 = arith.constant 0 : i32
    %c0_i32_0 = arith.constant 0 : i32
    return %arg0, %c0_i32 : i32, i32
  }
}

</mosaic_0001>

<bundles_post_ra>
// kernel: tpu_custom_call.1
= control target key start
LH: loop header
LB: loop body
LE: loop exit
PB: predicated region body
PF: predicated region fallthrough
CT: control target
= control target key end

     0   :  { %vm39_vm0 = vcmask 261120   ;;  %v455_v0 = vmov 0.0   ;;  %vm456_vm1 = vmmov 0   ;;  %v457_v2 = vmov 0   ;;  %s684_s0 = inlined_call_operand.vmem [shape: f32[128,32], index: 0, kind: input, shape index: {}]   ;;  %s685_s2 = inlined_call_operand.vmem [shape: f32[8,1], index: 2, kind: input, shape index: {}]   ;;  %s686_s1 = inlined_call_operand.vmem [shape: f32[8,32], index: 1, kind: input, shape index: {}]   ;;  %s687_s4 = inlined_call_operand.vmem [shape: s32[128,2], index: 4, kind: output, shape index: {1}]   ;;  %s688_s3 = inlined_call_operand.vmem [shape: f32[128,8], index: 3, kind: output, shape index: {0}]  }
   0x1   :  { %380 = vmatprep.subr.mxu0 %v455_v0  ;;  %v31_v1 = vld [vmem:[%s684_s0 + $0x78] sm:$0xff]  ;;  %412 = vmatprep.mubr.msk.f32.mxu0 %vm456_vm1, %v455_v0  ;;  %v30_v3 = vld [vmem:[%s684_s0 + $0x70] sm:$0xff]  ;;  %v33_v4 = vld [vmem:[%s685_s2] sm:$0xff]  ;;  %v161_v27 = vlaneseq  ;;  %vm268_vm10 = vcmask 1040384   ;;  %vm271_vm12 = vcmask 1041408   ;;  %vm321_vm15 = vcmask 15360  }
   0x2   :  { %381 = vmatpush3.xpose.msk.msra.mxu0 %vm39_vm0, %v31_v1  ;;  %450 = vset.pattern.permute.xlu0 %v457_v2  ;;  %v29_v5 = vld [vmem:[%s684_s0 + $0x68] sm:$0xff]  ;;  %v28_v6 = vld [vmem:[%s684_s0 + $0x60] sm:$0xff]  ;;  %v27_v7 = vld [vmem:[%s684_s0 + $0x58] sm:$0xff] }
   0x3   :  { %382 = vmatprep.subr.mxu0 %v455_v0  ;;  %36 = vperm.xlu0 %450, %v33_v4   ;;  %v26_v8 = vld [vmem:[%s684_s0 + $0x50] sm:$0xff]  ;;  %v25_v9 = vld [vmem:[%s684_s0 + $0x48] sm:$0xff]  ;;  %v24_v10 = vld [vmem:[%s684_s0 + $0x40] sm:$0xff]  ;;  %v162_v30 = vshrl.u32 %v161_v27, 7 }
   0x4   :  { %v23_v11 = vld [vmem:[%s684_s0 + $0x38] sm:$0xff]  ;;  %v22_v12 = vld [vmem:[%s684_s0 + $0x30] sm:$0xff]  ;;  %v21_v13 = vld [vmem:[%s684_s0 + $0x28] sm:$0xff] }
   0x5   :  { %v20_v14 = vld [vmem:[%s684_s0 + $0x20] sm:$0xff]  ;;  %v19_v15 = vld [vmem:[%s684_s0 + $0x18] sm:$0xff]  ;;  %v18_v16 = vld [vmem:[%s684_s0 + $0x10] sm:$0xff] }
   0x6   :  { %383 = vmatpush3.xpose.msk.msra.mxu0 %vm39_vm0, %v30_v3  ;;  %v17_v17 = vld [vmem:[%s684_s0 + $0x8] sm:$0xff]  ;;  %v16_v18 = vld [vmem:[%s684_s0] sm:$0xff] }
   0x7   :  { %384 = vmatprep.subr.mxu0 %v455_v0  ;;  %v32_v19 = vld [vmem:[%s686_s1] sm:$0xff] }
   0xa   :  { %385 = vmatpush3.xpose.msk.msra.mxu0 %vm39_vm0, %v29_v5 }
   0xb   :  { %386 = vmatprep.subr.mxu0 %v455_v0 }
   0xe   :  { %387 = vmatpush3.xpose.msk.msra.mxu0 %vm39_vm0, %v28_v6 }
   0xf   :  { %388 = vmatprep.subr.mxu0 %v455_v0 }
  0x12   :  { %389 = vmatpush3.xpose.msk.msra.mxu0 %vm39_vm0, %v27_v7 }
  0x13   :  { %390 = vmatprep.subr.mxu0 %v455_v0 }
  0x16   :  { %391 = vmatpush3.xpose.msk.msra.mxu0 %vm39_vm0, %v26_v8 }
  0x17   :  { %392 = vmatprep.subr.mxu0 %v455_v0 }
  0x1a   :  { %393 = vmatpush3.xpose.msk.msra.mxu0 %vm39_vm0, %v25_v9 }
  0x1b   :  { %394 = vmatprep.subr.mxu0 %v455_v0 }
  0x1e   :  { %395 = vmatpush3.xpose.msk.msra.mxu0 %vm39_vm0, %v24_v10 }
  0x1f   :  { %396 = vmatprep.subr.mxu0 %v455_v0 }
  0x22   :  { %397 = vmatpush3.xpose.msk.msra.mxu0 %vm39_vm0, %v23_v11 }
  0x23   :  { %398 = vmatprep.subr.mxu0 %v455_v0 }
  0x26   :  { %399 = vmatpush3.xpose.msk.msra.mxu0 %vm39_vm0, %v22_v12 }
  0x27   :  { %400 = vmatprep.subr.mxu0 %v455_v0 }
  0x2a   :  { %401 = vmatpush3.xpose.msk.msra.mxu0 %vm39_vm0, %v21_v13 }
  0x2b   :  { %402 = vmatprep.subr.mxu0 %v455_v0 }
  0x2e   :  { %403 = vmatpush3.xpose.msk.msra.mxu0 %vm39_vm0, %v20_v14 }
  0x2f   :  { %404 = vmatprep.subr.mxu0 %v455_v0 }
  0x32   :  { %405 = vmatpush3.xpose.msk.msra.mxu0 %vm39_vm0, %v19_v15 }
  0x33   :  { %406 = vmatprep.subr.mxu0 %v455_v0 }
  0x36   :  { %407 = vmatpush3.xpose.msk.msra.mxu0 %vm39_vm0, %v18_v16 }
  0x37   :  { %408 = vmatprep.subr.mxu0 %v455_v0 }
  0x3a   :  { %409 = vmatpush3.xpose.msk.msra.mxu0 %vm39_vm0, %v17_v17 }
  0x3b   :  { %410 = vmatprep.subr.mxu0 %v455_v0 }
  0x3e   :  { %411 = vmatpush3.xpose.msk.msra.mxu0 %vm39_vm0, %v16_v18 }
  0x41   :  { %413 = vmatmul.mubr.msk.f32.vlgmr.msra.gmra.mxu0 %vm39_vm0, %v32_v19  ;;  %vm251_vm0 = vcmask 64512  }
  0x7e   :  { %v37_v20 = vpop.permute.xlu0 %36 }
 0x101   :  { %v157_v21 = vpop.f32.mrf.mxu0 }
 0x102   :  { %v158_v22 = vadd.f32 %v157_v21, %v37_v20 }
 0x103   :  { %v414_v23 = vpop.f32.mrf.mxu0 }
 0x104   :  { %v163_v24 = vrot.slane %v158_v22, 4 }
 0x106   :  { %v164_v25 = vmax.f32 %v158_v22, %v163_v24 }
 0x108   :  { %v165_v26 = vrot.slane %v164_v25, 2 }
 0x10a   :  { %v166_v28 = vmax.f32 %v164_v25, %v165_v26 }
 0x10c   :  { %v167_v29 = vrot.slane %v166_v28, 1 }
 0x10e   :  { %v168_v31 = vmax.f32 %v166_v28, %v167_v29 }
 0x110   :  { %vm169_vm2 = vcmp.eq.f32.partialorder %v158_v22, %v168_v31 }
 0x111   :  { %v170_v32 = vsel %vm169_vm2, %v162_v30, 8 }
 0x112   :  { %v171_v33 = vrot.slane %v170_v32, 4 }
 0x114   :  { %vm172_vm3 = vcmp.lt.s32.totalorder %v170_v32, %v171_v33 }
 0x115   :  { %v173_v34 = vsel %vm172_vm3, %v170_v32, %v171_v33 }
 0x116   :  { %v174_v35 = vrot.slane %v173_v34, 2 }
 0x118   :  { %vm175_vm4 = vcmp.lt.s32.totalorder %v173_v34, %v174_v35 }
 0x119   :  { %v176_v36 = vsel %vm175_vm4, %v173_v34, %v174_v35 }
 0x11a   :  { %v177_v37 = vrot.slane %v176_v36, 1 }
 0x11c   :  { %vm178_vm5 = vcmp.lt.s32.totalorder %v176_v36, %v177_v37 }
 0x11d   :  { %v179_v38 = vsel %vm178_vm5, %v176_v36, %v177_v37 }
 0x11e   :  { %vm180_vm6 = vcmp.eq.s32.totalorder %v162_v30, %v179_v38 }
 0x11f   :  { %v181_v39 = vsel %vm180_vm6, -inf, %v158_v22 }
 0x120   :  { %v182_v40 = vrot.slane %v181_v39, 4 }
 0x122   :  { %v183_v41 = vmax.f32 %v181_v39, %v182_v40 }
 0x124   :  { %v184_v42 = vrot.slane %v183_v41, 2 }
 0x126   :  { %v185_v43 = vmax.f32 %v183_v41, %v184_v42 }
 0x128   :  { %v186_v44 = vrot.slane %v185_v43, 1 }
 0x12a   :  { %v187_v45 = vmax.f32 %v185_v43, %v186_v44 }
 0x12c   :  { %vm188_vm7 = vcmp.eq.f32.partialorder %v181_v39, %v187_v45 }
 0x12d   :  { %v189_v46 = vsel %vm188_vm7, %v162_v30, 8 }
 0x12e   :  { %v190_v47 = vrot.slane %v189_v46, 4 }
 0x130   :  { %vm191_vm8 = vcmp.lt.s32.totalorder %v189_v46, %v190_v47 }
 0x131   :  { %v192_v48 = vsel %vm191_vm8, %v189_v46, %v190_v47 }
 0x132   :  { %v193_v49 = vrot.slane %v192_v48, 2 }
 0x134   :  { %vm194_vm9 = vcmp.lt.s32.totalorder %v192_v48, %v193_v49 }
 0x135   :  { %v195_v50 = vsel %vm194_vm9, %v192_v48, %v193_v49 }
 0x136   :  { %v196_v51 = vrot.slane %v195_v50, 1 }
 0x138   :  { %vm197_vm11 = vcmp.lt.s32.totalorder %v195_v50, %v196_v51 }
 0x139   :  { %v198_v52 = vsel %vm197_vm11, %v195_v50, %v196_v51 }
 0x13a   :  { %v269_v53 = vsel %vm268_vm10, %v179_v38, %v198_v52  ;;  %vm199_vm13 = vcmp.eq.s32.totalorder %v162_v30, %v198_v52 }
 0x13b   :  { %v270_v54 = vcvt.s32.f32 %v269_v53  ;;  %vm200_vm14 = vmor %vm180_vm6, %vm199_vm13 }
 0x13c   :  { %v201_v55 = vsel %vm200_vm14, %v158_v22, -inf }
 0x13d   :  { %v272_v56 = vsel %vm271_vm12, %v270_v54, 0.0  ;;  %v202_v57 = vrot.slane %v201_v55, 4 }
 0x13e   :  { %273 = vxpose.xlu0.b32.start.end [1/1] (short) %v272_v56, 128 }
 0x13f   :  { %v203_v58 = vmax.f32 %v201_v55, %v202_v57 }
 0x141   :  { %v204_v59 = vrot.slane %v203_v58, 2 }
 0x143   :  { %v205_v60 = vmax.f32 %v203_v58, %v204_v59 }
 0x145   :  { %v206_v61 = vrot.slane %v205_v60, 1 }
 0x147   :  { %v207_v62 = vmax.f32 %v205_v60, %v206_v61 }
 0x149   :  { %v208_v63 = vsub.f32 %v201_v55, %v207_v62 }
 0x14b   :  { %v209_v0 = vmul.f32 1.442695, %v208_v63 }
 0x14d   :  { %451 = vpow2.f32 %v209_v0 }
 0x15a   :  { %v452_v1 = vpop.eup %451 }
 0x15b   :  { %v211_v2 = vrot.slane %v452_v1, 4 }
 0x15d   :  { %v212_v3 = vadd.f32 %v452_v1, %v211_v2 }
 0x15f   :  { %v213_v4 = vrot.slane %v212_v3, 2 }
 0x161   :  { %v214_v5 = vadd.f32 %v213_v4, %v212_v3 }
 0x163   :  { %v215_v6 = vrot.slane %v214_v5, 1 }
 0x165   :  { %v216_v7 = vadd.f32 %v215_v6, %v214_v5 }
 0x167   :  { %453 = vrcp.f32 %v216_v7 }
 0x174   :  { %v454_v8 = vpop.eup %453 }
 0x175   :  { %v218_v9 = vmul.f32 %v454_v8, %v452_v1 }
 0x177   :  { %219 = vxpose.xlu1.b32.start.end [1/1] (short) %v218_v9, 128 }
 0x1ba   :  { %v289_v10 = vpop.trf.xlu0 }
 0x1bb   :  { %v415_v11 = vtrunc.f32 %v289_v10 }
 0x1bd   :  { %v416_v12 = vcvt.f32.s32 %v415_v11 }
 0x1be   :  { %v290_v13 = vpop.trf.xlu0 }
 0x1bf   :  { %322 = vst.msk [vmem:[%s687_s4] sm:$0xff] %vm321_vm15, %v416_v12  ;;  %v417_v14 = vtrunc.f32 %v290_v13 }
 0x1c1   :  { %v418_v15 = vcvt.f32.s32 %v417_v14 }
 0x1c2   :  { %v291_v16 = vpop.trf.xlu0 }
 0x1c3   :  { %323 = vst.msk [vmem:[%s687_s4 + $0x8] sm:$0xff] %vm321_vm15, %v418_v15  ;;  %v419_v17 = vtrunc.f32 %v291_v16 }
 0x1c5   :  { %v420_v18 = vcvt.f32.s32 %v419_v17 }
 0x1c6   :  { %v292_v19 = vpop.trf.xlu0 }
 0x1c7   :  { %324 = vst.msk [vmem:[%s687_s4 + $0x10] sm:$0xff] %vm321_vm15, %v420_v18  ;;  %v421_v20 = vtrunc.f32 %v292_v19 }
 0x1c9   :  { %v422_v21 = vcvt.f32.s32 %v421_v20 }
 0x1ca   :  { %v293_v22 = vpop.trf.xlu0 }
 0x1cb   :  { %325 = vst.msk [vmem:[%s687_s4 + $0x18] sm:$0xff] %vm321_vm15, %v422_v21  ;;  %v423_v23 = vtrunc.f32 %v293_v22 }
 0x1cd   :  { %v424_v24 = vcvt.f32.s32 %v423_v23 }
 0x1ce   :  { %v294_v25 = vpop.trf.xlu0 }
 0x1cf   :  { %326 = vst.msk [vmem:[%s687_s4 + $0x20] sm:$0xff] %vm321_vm15, %v424_v24  ;;  %v425_v26 = vtrunc.f32 %v294_v25 }
 0x1d1   :  { %v426_v27 = vcvt.f32.s32 %v425_v26 }
 0x1d2   :  { %v295_v28 = vpop.trf.xlu0 }
 0x1d3   :  { %327 = vst.msk [vmem:[%s687_s4 + $0x28] sm:$0xff] %vm321_vm15, %v426_v27  ;;  %v427_v29 = vtrunc.f32 %v295_v28 }
 0x1d5   :  { %v428_v30 = vcvt.f32.s32 %v427_v29 }
 0x1d6   :  { %v296_v31 = vpop.trf.xlu0 }
 0x1d7   :  { %328 = vst.msk [vmem:[%s687_s4 + $0x30] sm:$0xff] %vm321_vm15, %v428_v30  ;;  %v429_v32 = vtrunc.f32 %v296_v31 }
 0x1d9   :  { %v430_v33 = vcvt.f32.s32 %v429_v32 }
 0x1da   :  { %v297_v34 = vpop.trf.xlu0 }
 0x1db   :  { %329 = vst.msk [vmem:[%s687_s4 + $0x38] sm:$0xff] %vm321_vm15, %v430_v33  ;;  %v431_v35 = vtrunc.f32 %v297_v34 }
 0x1dd   :  { %v432_v36 = vcvt.f32.s32 %v431_v35 }
 0x1de   :  { %v298_v37 = vpop.trf.xlu0 }
 0x1df   :  { %330 = vst.msk [vmem:[%s687_s4 + $0x40] sm:$0xff] %vm321_vm15, %v432_v36  ;;  %v433_v38 = vtrunc.f32 %v298_v37 }
 0x1e1   :  { %v434_v39 = vcvt.f32.s32 %v433_v38 }
 0x1e2   :  { %v299_v40 = vpop.trf.xlu0 }
 0x1e3   :  { %331 = vst.msk [vmem:[%s687_s4 + $0x48] sm:$0xff] %vm321_vm15, %v434_v39  ;;  %v435_v41 = vtrunc.f32 %v299_v40 }
 0x1e5   :  { %v436_v42 = vcvt.f32.s32 %v435_v41 }
 0x1e6   :  { %v300_v43 = vpop.trf.xlu0 }
 0x1e7   :  { %332 = vst.msk [vmem:[%s687_s4 + $0x50] sm:$0xff] %vm321_vm15, %v436_v42  ;;  %v437_v44 = vtrunc.f32 %v300_v43 }
 0x1e9   :  { %v438_v45 = vcvt.f32.s32 %v437_v44 }
 0x1ea   :  { %v301_v46 = vpop.trf.xlu0 }
 0x1eb   :  { %333 = vst.msk [vmem:[%s687_s4 + $0x58] sm:$0xff] %vm321_vm15, %v438_v45  ;;  %v439_v47 = vtrunc.f32 %v301_v46 }
 0x1ed   :  { %v440_v48 = vcvt.f32.s32 %v439_v47 }
 0x1ee   :  { %v302_v49 = vpop.trf.xlu0 }
 0x1ef   :  { %334 = vst.msk [vmem:[%s687_s4 + $0x60] sm:$0xff] %vm321_vm15, %v440_v48  ;;  %v441_v50 = vtrunc.f32 %v302_v49 }
 0x1f1   :  { %v442_v51 = vcvt.f32.s32 %v441_v50 }
 0x1f2   :  { %v303_v52 = vpop.trf.xlu0 }
 0x1f3   :  { %v235_v53 = vpop.trf.xlu1  ;;  %335 = vst.msk [vmem:[%s687_s4 + $0x68] sm:$0xff] %vm321_vm15, %v442_v51  ;;  %v443_v54 = vtrunc.f32 %v303_v52 }
 0x1f4   :  { %252 = vst.msk [vmem:[%s688_s3] sm:$0xff] %vm251_vm0, %v235_v53 }
 0x1f5   :  { %v444_v55 = vcvt.f32.s32 %v443_v54 }
 0x1f6   :  { %v304_v56 = vpop.trf.xlu0 }
 0x1f7   :  { %v236_v57 = vpop.trf.xlu1  ;;  %336 = vst.msk [vmem:[%s687_s4 + $0x70] sm:$0xff] %vm321_vm15, %v444_v55  ;;  %v445_v58 = vtrunc.f32 %v304_v56 }
 0x1f8   :  { %253 = vst.msk [vmem:[%s688_s3 + $0x8] sm:$0xff] %vm251_vm0, %v236_v57 }
 0x1f9   :  { %v446_v59 = vcvt.f32.s32 %v445_v58 }
 0x1fb   :  { %v237_v60 = vpop.trf.xlu1  ;;  %337 = vst.msk [vmem:[%s687_s4 + $0x78] sm:$0xff] %vm321_vm15, %v446_v59 }
 0x1fc   :  { %254 = vst.msk [vmem:[%s688_s3 + $0x10] sm:$0xff] %vm251_vm0, %v237_v60 }
 0x1ff   :  { %v238_v61 = vpop.trf.xlu1 }
 0x200   :  { %255 = vst.msk [vmem:[%s688_s3 + $0x18] sm:$0xff] %vm251_vm0, %v238_v61 }
 0x203   :  { %v239_v62 = vpop.trf.xlu1 }
 0x204   :  { %256 = vst.msk [vmem:[%s688_s3 + $0x20] sm:$0xff] %vm251_vm0, %v239_v62 }
 0x207   :  { %v240_v63 = vpop.trf.xlu1 }
 0x208   :  { %257 = vst.msk [vmem:[%s688_s3 + $0x28] sm:$0xff] %vm251_vm0, %v240_v63 }
 0x20b   :  { %v241_v0 = vpop.trf.xlu1 }
 0x20c   :  { %258 = vst.msk [vmem:[%s688_s3 + $0x30] sm:$0xff] %vm251_vm0, %v241_v0 }
 0x20f   :  { %v242_v1 = vpop.trf.xlu1 }
 0x210   :  { %259 = vst.msk [vmem:[%s688_s3 + $0x38] sm:$0xff] %vm251_vm0, %v242_v1 }
 0x213   :  { %v243_v2 = vpop.trf.xlu1 }
 0x214   :  { %260 = vst.msk [vmem:[%s688_s3 + $0x40] sm:$0xff] %vm251_vm0, %v243_v2 }
 0x217   :  { %v244_v3 = vpop.trf.xlu1 }
 0x218   :  { %261 = vst.msk [vmem:[%s688_s3 + $0x48] sm:$0xff] %vm251_vm0, %v244_v3 }
 0x21b   :  { %v245_v4 = vpop.trf.xlu1 }
 0x21c   :  { %262 = vst.msk [vmem:[%s688_s3 + $0x50] sm:$0xff] %vm251_vm0, %v245_v4 }
 0x21f   :  { %v246_v5 = vpop.trf.xlu1 }
 0x220   :  { %263 = vst.msk [vmem:[%s688_s3 + $0x58] sm:$0xff] %vm251_vm0, %v246_v5 }
 0x223   :  { %v247_v6 = vpop.trf.xlu1 }
 0x224   :  { %264 = vst.msk [vmem:[%s688_s3 + $0x60] sm:$0xff] %vm251_vm0, %v247_v6 }
 0x227   :  { %v248_v7 = vpop.trf.xlu1 }
 0x228   :  { %265 = vst.msk [vmem:[%s688_s3 + $0x68] sm:$0xff] %vm251_vm0, %v248_v7 }
 0x22b   :  { %v249_v8 = vpop.trf.xlu1 }
 0x22c   :  { %266 = vst.msk [vmem:[%s688_s3 + $0x70] sm:$0xff] %vm251_vm0, %v249_v8 }
 0x22f   :  { %v250_v9 = vpop.trf.xlu1 }
 0x230   :  { %267 = vst.msk [vmem:[%s688_s3 + $0x78] sm:$0xff] %vm251_vm0, %v250_v9 }

</bundles_post_ra>
